<compile_context>
chip_gen: v5e
topology: v5e:2x2
jax: 0.10.0
libtpu: 0.0.40
codegen_flags: <defaults>
</compile_context>

<pallas_src>
import jax
import jax.numpy as jnp
import numpy as np
from jax.experimental import pallas as pl
from jax.experimental.pallas import tpu as pltpu


def _round_up(x, m):
    return (x + m - 1) // m * m


# --------------------------------------------------------------------------
# Kernels
# --------------------------------------------------------------------------
def _mlp_kernel(t_ref, h_ref, x_ref, w1h_ref, w1x_ref, w1t_ref, b1_ref,
                w2_ref, b2_ref, out_ref):
    """One level: Linear -> ReLU -> Linear, lane-dense [TB, O_pad] output tile.

    The time feature is folded into the first-layer bias inside the kernel
    (b1 + t * W1_time_row), so no padded/concatenated input array is needed.
    """
    t = t_ref[0]                                                     # SMEM scalar
    b1_eff = b1_ref[...] + t * w1t_ref[...]                          # f32 [1, Hp]
    h1 = (jnp.dot(h_ref[...], w1h_ref[...],
                  preferred_element_type=jnp.float32)
          + jnp.dot(x_ref[...], w1x_ref[...],
                    preferred_element_type=jnp.float32)
          + b1_eff)                                                  # f32 [TB, Hp]
    h1 = jnp.maximum(h1, 0.0)                                        # ReLU (f32 VPU)
    out = jnp.dot(h1.astype(w2_ref.dtype), w2_ref[...],
                  preferred_element_type=jnp.float32) + b2_ref[...]  # f32 [TB, Op]
    out_ref[...] = out.astype(out_ref.dtype)


def _mlp_both_kernel(t_ref, h_ref, x_ref, w1h_ref, w1x_ref, w1t_ref, b1_ref,
                     w2g_ref, w2l_ref, b2_ref, out_ref):
    """Fused global+local: shared first matmul pair, split second matmuls.

    Splitting the second layer into two K=128 dots (instead of one K=256
    block-diagonal dot) avoids structural-zero MXU work on v5e's 128x128 MXU;
    on v6e/v7x this kernel is memory-bound so the MXU difference is noise.
    """
    t = t_ref[0]
    b1_eff = b1_ref[...] + t * w1t_ref[...]                          # f32 [1, 2*Hp]
    h1 = (jnp.dot(h_ref[...], w1h_ref[...],
                  preferred_element_type=jnp.float32)
          + jnp.dot(x_ref[...], w1x_ref[...],
                    preferred_element_type=jnp.float32)
          + b1_eff)                                                  # f32 [TB, 2*Hp]
    h1 = jnp.maximum(h1, 0.0)
    hp = w2g_ref.shape[0]                                            # 128
    op = w2g_ref.shape[1]                                            # 128
    out_g = jnp.dot(h1[:, :hp].astype(w2g_ref.dtype), w2g_ref[...],
                    preferred_element_type=jnp.float32) + b2_ref[:, :op]
    out_l = jnp.dot(h1[:, hp:].astype(w2l_ref.dtype), w2l_ref[...],
                    preferred_element_type=jnp.float32) + b2_ref[:, op:]
    out_ref[:, :op] = out_g.astype(out_ref.dtype)                    # lane-aligned
    out_ref[:, op:] = out_l.astype(out_ref.dtype)                    # lane-aligned


# --------------------------------------------------------------------------
# pallas_call wrapper
# --------------------------------------------------------------------------
def _mlp_pallas(kernel_fn, t_arr, h, x, weights, tb, o_out, out_dtype):
    """h: [B_pad, Dh], x: [B_pad, Dx] with B_pad % tb == 0.  Returns [B_pad, o_out]."""
    b_pad, d_h = h.shape
    d_x = x.shape[1]
    grid = (b_pad // tb,)

    # Advisory cost estimate: this kernel is bytes-dominated.
    out_isz = np.dtype(out_dtype).itemsize
    bytes_accessed = int(h.size) * h.dtype.itemsize \
        + int(x.size) * x.dtype.itemsize \
        + b_pad * o_out * out_isz \
        + sum(int(w.size) * w.dtype.itemsize for w in weights)
    flops = 2 * b_pad * sum(int(w.shape[0]) * int(w.shape[1])
                            for w in weights if w.shape[0] > 1)

    return pl.pallas_call(
        kernel_fn,
        out_shape=jax.ShapeDtypeStruct((b_pad, o_out), out_dtype),
        grid=grid,
        in_specs=[
            pl.BlockSpec(memory_space=pltpu.MemorySpace.SMEM),       # t scalar
            pl.BlockSpec((tb, d_h), lambda i: (i, 0)),               # h stream
            pl.BlockSpec((tb, d_x), lambda i: (i, 0)),               # x_scale stream
        ] + [pl.BlockSpec(w.shape, lambda i: (0, 0)) for w in weights],  # resident
        out_specs=pl.BlockSpec((tb, o_out), lambda i: (i, 0)),
        compiler_params=pltpu.CompilerParams(
            dimension_semantics=("parallel",)),                      # v7x megacore
        cost_estimate=pl.CostEstimate(flops=int(flops), transcendentals=0,
                                      bytes_accessed=int(bytes_accessed)),
    )(t_arr, h, x, *weights)


# --------------------------------------------------------------------------
# Module
# --------------------------------------------------------------------------
class HierarchicalNeuralDynamics:
    """JAX/Pallas port of the PyTorch module (forward only)."""

    LANE = 128
    SUBLANE = 8
    MAX_TILE = 2048   # v6e could go higher (more scoped VMEM, single TC), but
                      # measured roofline plateaus around 1-2k rows anyway.

    def __init__(self, hidden_dim, input_dim, key, compute_dtype=jnp.float32):
        self.hidden_dim = hidden_dim
        self.input_dim = input_dim
        self.compute_dtype = compute_dtype

        self.dh_pad = _round_up(hidden_dim, self.SUBLANE)          # 32 -> 32
        self.dx_pad = _round_up(input_dim, self.SUBLANE)           # 4  -> 8
        self.h1_pad = _round_up(64, self.LANE)                     # 64 -> 128
        self.o_pad = _round_up(2 * hidden_dim, self.LANE)          # 64 -> 128

        def init_linear(k, fan_in, fan_out):
            kw, kb = jax.random.split(k)
            bound = 1.0 / float(fan_in) ** 0.5
            w = jax.random.uniform(kw, (fan_out, fan_in), jnp.float32, -bound, bound)
            b = jax.random.uniform(kb, (fan_out,), jnp.float32, -bound, bound)
            return w, b

        d_in = hidden_dim + input_dim + 1
        k1, k2, k3, k4 = jax.random.split(key, 4)
        gw1, gb1 = init_linear(k1, d_in, 64)
        gw2, gb2 = init_linear(k2, 64, hidden_dim * 2)
        lw1, lb1 = init_linear(k3, d_in, 64)
        lw2, lb2 = init_linear(k4, 64, hidden_dim * 2)

        # PyTorch-layout params, kept for reference checks.
        self.raw_params = {
            "global": (gw1, gb1, gw2, gb2),
            "local": (lw1, lb1, lw2, lb2),
        }

        def pad2(a, rows, cols):
            r, c = a.shape
            return jnp.pad(a, ((0, rows - r), (0, cols - c)))

        def prep(w1, b1, w2, b2):
            # Pre-transpose to (in, out); split the first layer into the h /
            # x_scale / time pieces so the kernel never needs a concatenated
            # padded input.  MXU operands in compute_dtype, biases stay f32.
            w1t_full = w1.T                                        # [d_in, 64]
            w1h = pad2(w1t_full[:hidden_dim], self.dh_pad,
                       self.h1_pad).astype(compute_dtype)
            w1x = pad2(w1t_full[hidden_dim:hidden_dim + input_dim], self.dx_pad,
                       self.h1_pad).astype(compute_dtype)
            w1t = pad2(w1t_full[hidden_dim + input_dim:], 1, self.h1_pad)   # f32
            b1p = pad2(b1[None, :], 1, self.h1_pad)                          # f32
            w2p = pad2(w2.T, self.h1_pad, self.o_pad).astype(compute_dtype)
            b2p = pad2(b2[None, :], 1, self.o_pad)                           # f32
            return w1h, w1x, w1t, b1p, w2p, b2p

        g = prep(gw1, gb1, gw2, gb2)
        l = prep(lw1, lb1, lw2, lb2)
        self.params = {"global": g, "local": l}

        # Fused "both levels in one launch": concat first-layer weights along
        # the output dim; keep the two second-layer weights separate (split
        # K=128 dots in the kernel instead of a block-diagonal K=256 matmul).
        gw1h, gw1x, gw1t, gb1p, gw2p, gb2p = g
        lw1h, lw1x, lw1t, lb1p, lw2p, lb2p = l
        self.params["both"] = (
            jnp.concatenate([gw1h, lw1h], axis=1),                 # [Dh, 2*Hp]
            jnp.concatenate([gw1x, lw1x], axis=1),                 # [Dx, 2*Hp]
            jnp.concatenate([gw1t, lw1t], axis=1),                 # [1, 2*Hp] f32
            jnp.concatenate([gb1p, lb1p], axis=1),                 # [1, 2*Hp] f32
            gw2p,                                                  # [Hp, Op]
            lw2p,                                                  # [Hp, Op]
            jnp.concatenate([gb2p, lb2p], axis=1),                 # [1, 2*Op] f32
        )

    # --- helpers -----------------------------------------------------------
    def _batch_tile(self, b):
        """Large tiles (per-step overhead ~0.35us dominates small tiles), but
        keep >= 2 grid steps for big batches so v7x megacore splits the work."""
        b8 = _round_up(max(b, 1), self.SUBLANE)
        if b8 <= 1024:
            return b8                               # single step
        n_steps = max(2, -(-b8 // self.MAX_TILE))   # >=2 steps, <=2048 rows/tile
        return _round_up(-(-b8 // n_steps), self.SUBLANE)

    def _prep_inputs(self, t, h, x_scale, tb):
        b = h.shape[0]
        b_pad = _round_up(b, tb)
        t = jnp.asarray(t, jnp.float32)
        t_scalar = t if t.ndim == 0 else t.reshape(-1)[0]          # torch: t[0]
        t_arr = jnp.reshape(t_scalar, (1,))
        # Only tiny batch / 8-lane pads; both are XLA no-ops for nice shapes.
        h_p = jnp.pad(jnp.asarray(h, jnp.float32),
                      ((0, b_pad - b), (0, self.dh_pad - self.hidden_dim)))
        x_p = jnp.pad(jnp.asarray(x_scale, jnp.float32),
                      ((0, b_pad - b), (0, self.dx_pad - self.input_dim)))
        return t_arr, h_p.astype(self.compute_dtype), x_p.astype(self.compute_dtype)

    # --- forward (matches PyTorch forward: one level per call) -------------
    def __call__(self, t, state, level="global"):
        h, x_scale = state
        b = h.shape[0]
        tb = self._batch_tile(b)
        t_arr, h_p, x_p = self._prep_inputs(t, h, x_scale, tb)
        which = "global" if level == "global" else "local"
        out = _mlp_pallas(_mlp_kernel, t_arr, h_p, x_p, self.params[which],
                          tb, self.o_pad, self.compute_dtype)       # [B_pad, Op]
        upd = out[:b, : 2 * self.hidden_dim]                        # drop padding
        return upd[:, : self.hidden_dim], upd[:, self.hidden_dim:]

    # --- fused path: both levels in a single pallas_call --------------------
    def forward_both(self, t, state):
        h, x_scale = state
        b = h.shape[0]
        tb = self._batch_tile(b)
        t_arr, h_p, x_p = self._prep_inputs(t, h, x_scale, tb)
        out = _mlp_pallas(_mlp_both_kernel, t_arr, h_p, x_p, self.params["both"],
                          tb, 2 * self.o_pad, self.compute_dtype)   # [B_pad, 2*Op]
        H, Op = self.hidden_dim, self.o_pad
        g = out[:b, : 2 * H]
        l = out[:b, Op: Op + 2 * H]
        return (g[:, :H], g[:, H:]), (l[:, :H], l[:, H:])


if __name__ == "__main__":
    hidden_dim = 32
    input_dim = 4
    batch = 2

    key = jax.random.PRNGKey(0)
    kmod, kh, kx, kh2, kx2 = jax.random.split(key, 5)

    model = HierarchicalNeuralDynamics(hidden_dim, input_dim, kmod)

    t = jnp.asarray(0.5, jnp.float32)
    h = jax.random.normal(kh, (batch, hidden_dim), jnp.float32)
    x_scale = jax.random.normal(kx, (batch, input_dim), jnp.float32)

    mu_g, lv_g = model(t, (h, x_scale), level="global")
    mu_l, lv_l = model(t, (h, x_scale), level="local")
    (fmu_g, flv_g), (fmu_l, flv_l) = model.forward_both(t, (h, x_scale))
    jax.block_until_ready((mu_g, lv_g, mu_l, lv_l, fmu_g, flv_g, fmu_l, flv_l))

    # Pure-JAX reference (same math, unpadded, PyTorch layout).
    def ref(inp, raw):
        w1, b1, w2, b2 = raw
        return jnp.maximum(inp @ w1.T + b1, 0.0) @ w2.T + b2

    time_feature = jnp.broadcast_to(jnp.reshape(t, (1, 1)), (batch, 1))
    inp = jnp.concatenate([h, x_scale, time_feature], axis=-1)

    for name, (mu, lv) in [("global", (mu_g, lv_g)), ("local", (mu_l, lv_l))]:
        upd = ref(inp, model.raw_params[name])
        assert jnp.allclose(mu, upd[:, :hidden_dim], atol=1e-4), f"{name} mu mismatch"
        assert jnp.allclose(lv, upd[:, hidden_dim:], atol=1e-4), f"{name} logvar mismatch"
        assert mu.shape == (batch, hidden_dim) and lv.shape == (batch, hidden_dim)

    # Fused launch must reproduce the single-level launches.
    assert jnp.allclose(fmu_g, mu_g, atol=1e-4) and jnp.allclose(flv_g, lv_g, atol=1e-4)
    assert jnp.allclose(fmu_l, mu_l, atol=1e-4) and jnp.allclose(flv_l, lv_l, atol=1e-4)

    # Larger batch exercises the >=2-step batch grid (v7x megacore) and the
    # batch-pad / padding-removal path.
    big_b = 1300
    hb = jax.random.normal(kh2, (big_b, hidden_dim), jnp.float32)
    xb = jax.random.normal(kx2, (big_b, input_dim), jnp.float32)
    bmu, blv = model(t, (hb, xb), level="local")
    jax.block_until_ready((bmu, blv))
    tf_b = jnp.broadcast_to(jnp.reshape(t, (1, 1)), (big_b, 1))
    upd_b = ref(jnp.concatenate([hb, xb, tf_b], axis=-1), model.raw_params["local"])
    assert bmu.shape == (big_b, hidden_dim) and blv.shape == (big_b, hidden_dim)
    assert jnp.allclose(bmu, upd_b[:, :hidden_dim], atol=1e-4), "big-batch mu mismatch"
    assert jnp.allclose(blv, upd_b[:, hidden_dim:], atol=1e-4), "big-batch logvar mismatch"

    # bf16-streaming variant (halves HBM bytes for activations and outputs;
    # f32 accumulation + f32 bias/ReLU inside the kernel): loose tolerance.
    model_bf16 = HierarchicalNeuralDynamics(hidden_dim, input_dim, kmod,
                                            compute_dtype=jnp.bfloat16)
    qmu, qlv = model_bf16(t, (h, x_scale), level="global")
    jax.block_until_ready((qmu, qlv))
    upd = ref(inp, model_bf16.raw_params["global"])
    assert jnp.allclose(qmu.astype(jnp.float32), upd[:, :hidden_dim],
                        rtol=5e-2, atol=5e-2), "bf16 mu mismatch"
    assert jnp.allclose(qlv.astype(jnp.float32), upd[:, hidden_dim:],
                        rtol=5e-2, atol=5e-2), "bf16 logvar mismatch"

    print("KERNEL_OK")
</pallas_src>

<mosaic_0001>
module attributes {stable_mosaic.version = 11 : i64} {
  func.func @_mlp_kernel(%arg0: i32, %arg1: memref<1xf32, #tpu.memory_space<smem>>, %arg2: memref<8x32xf32, #tpu.memory_space<vmem>>, %arg3: memref<8x8xf32, #tpu.memory_space<vmem>>, %arg4: memref<32x128xf32, #tpu.memory_space<vmem>>, %arg5: memref<8x128xf32, #tpu.memory_space<vmem>>, %arg6: memref<1x128xf32, #tpu.memory_space<vmem>>, %arg7: memref<1x128xf32, #tpu.memory_space<vmem>>, %arg8: memref<128x128xf32, #tpu.memory_space<vmem>>, %arg9: memref<1x128xf32, #tpu.memory_space<vmem>>, %arg10: memref<8x128xf32, #tpu.memory_space<vmem>>) attributes {dimension_semantics = [#tpu.dimension_semantics<parallel>], iteration_bounds = array<i64: 1>, scalar_prefetch = 0 : i64, scratch_operands = 0 : i64, tpu.core_type = #tpu.core_type<tc>, window_params = [{transform_indices = @transform_0, window_bounds = array<i64: 1>}, {transform_indices = @transform_1, window_bounds = array<i64: 8, 32>}, {transform_indices = @transform_2, window_bounds = array<i64: 8, 8>}, {pipeline_mode = #tpu.pipeline_mode<synchronous>, transform_indices = @transform_3, window_bounds = array<i64: 32, 128>}, {pipeline_mode = #tpu.pipeline_mode<synchronous>, transform_indices = @transform_4, window_bounds = array<i64: 8, 128>}, {pipeline_mode = #tpu.pipeline_mode<synchronous>, transform_indices = @transform_5, window_bounds = array<i64: 1, 128>}, {pipeline_mode = #tpu.pipeline_mode<synchronous>, transform_indices = @transform_6, window_bounds = array<i64: 1, 128>}, {pipeline_mode = #tpu.pipeline_mode<synchronous>, transform_indices = @transform_7, window_bounds = array<i64: 128, 128>}, {pipeline_mode = #tpu.pipeline_mode<synchronous>, transform_indices = @transform_8, window_bounds = array<i64: 1, 128>}, {transform_indices = @transform_9, window_bounds = array<i64: 8, 128>}]} {
    %c0 = arith.constant 0 : index
    %0 = memref.load %arg1[%c0] : memref<1xf32, #tpu.memory_space<smem>>
    %c0_0 = arith.constant 0 : index
    %c0_1 = arith.constant 0 : index
    %1 = vector.load %arg7[%c0_0, %c0_1] : memref<1x128xf32, #tpu.memory_space<vmem>>, vector<1x128xf32>
    %c0_2 = arith.constant 0 : index
    %c0_3 = arith.constant 0 : index
    %2 = vector.load %arg6[%c0_2, %c0_3] : memref<1x128xf32, #tpu.memory_space<vmem>>, vector<1x128xf32>
    %3 = vector.broadcast %0 : f32 to vector<1x128xf32>
    %4 = arith.mulf %3, %2 : vector<1x128xf32>
    %5 = arith.addf %1, %4 : vector<1x128xf32>
    %c0_4 = arith.constant 0 : index
    %c0_5 = arith.constant 0 : index
    %6 = vector.load %arg2[%c0_4, %c0_5] : memref<8x32xf32, #tpu.memory_space<vmem>>, vector<8x32xf32>
    %c0_6 = arith.constant 0 : index
    %c0_7 = arith.constant 0 : index
    %7 = vector.load %arg4[%c0_6, %c0_7] : memref<32x128xf32, #tpu.memory_space<vmem>>, vector<32x128xf32>
    %cst = arith.constant dense<0.000000e+00> : vector<8x128xf32>
    %8 = tpu.matmul %6, %7, %cst {dimension_numbers = #tpu.dot_dimension_numbers<[1], [0], [0], [1], [0, 0, 1, 1], [], []>} : vector<8x32xf32>, vector<32x128xf32>, vector<8x128xf32> -> vector<8x128xf32>
    %c0_8 = arith.constant 0 : index
    %c0_9 = arith.constant 0 : index
    %9 = vector.load %arg3[%c0_8, %c0_9] : memref<8x8xf32, #tpu.memory_space<vmem>>, vector<8x8xf32>
    %c0_10 = arith.constant 0 : index
    %c0_11 = arith.constant 0 : index
    %10 = vector.load %arg5[%c0_10, %c0_11] : memref<8x128xf32, #tpu.memory_space<vmem>>, vector<8x128xf32>
    %cst_12 = arith.constant dense<0.000000e+00> : vector<8x128xf32>
    %11 = tpu.matmul %9, %10, %cst_12 {dimension_numbers = #tpu.dot_dimension_numbers<[1], [0], [0], [1], [0, 0, 1, 1], [], []>} : vector<8x8xf32>, vector<8x128xf32>, vector<8x128xf32> -> vector<8x128xf32>
    %12 = arith.addf %8, %11 : vector<8x128xf32>
    %13 = vector.broadcast %5 : vector<1x128xf32> to vector<8x128xf32>
    %14 = arith.addf %12, %13 : vector<8x128xf32>
    %cst_13 = arith.constant 0.000000e+00 : f32
    %15 = vector.broadcast %cst_13 : f32 to vector<8x128xf32>
    %16 = arith.maximumf %14, %15 : vector<8x128xf32>
    %c0_14 = arith.constant 0 : index
    %c0_15 = arith.constant 0 : index
    %17 = vector.load %arg8[%c0_14, %c0_15] : memref<128x128xf32, #tpu.memory_space<vmem>>, vector<128x128xf32>
    %cst_16 = arith.constant dense<0.000000e+00> : vector<8x128xf32>
    %18 = tpu.matmul %16, %17, %cst_16 {dimension_numbers = #tpu.dot_dimension_numbers<[1], [0], [0], [1], [0, 0, 1, 1], [], []>} : vector<8x128xf32>, vector<128x128xf32>, vector<8x128xf32> -> vector<8x128xf32>
    %c0_17 = arith.constant 0 : index
    %c0_18 = arith.constant 0 : index
    %19 = vector.load %arg9[%c0_17, %c0_18] : memref<1x128xf32, #tpu.memory_space<vmem>>, vector<1x128xf32>
    %20 = vector.broadcast %19 : vector<1x128xf32> to vector<8x128xf32>
    %21 = arith.addf %18, %20 : vector<8x128xf32>
    %c0_19 = arith.constant 0 : index
    %c0_20 = arith.constant 0 : index
    %22 = vector.load %arg10[%c0_19, %c0_20] : memref<8x128xf32, #tpu.memory_space<vmem>>, vector<8x128xf32>
    tpu.vector_store %arg10[%c0_19, %c0_20], %21 {strides = array<i32>} : memref<8x128xf32, #tpu.memory_space<vmem>>, vector<8x128xf32>,
    return
  }
  func.func @transform_0(%arg0: i32) -> i32 {
    %c0_i32 = arith.constant 0 : i32
    %c0_i32_0 = arith.constant 0 : i32
    return %c0_i32 : i32
  }
  func.func @transform_1(%arg0: i32) -> (i32, i32) {
    %c0_i32 = arith.constant 0 : i32
    %c0_i32_0 = arith.constant 0 : i32
    return %arg0, %c0_i32 : i32, i32
  }
  func.func @transform_2(%arg0: i32) -> (i32, i32) {
    %c0_i32 = arith.constant 0 : i32
    %c0_i32_0 = arith.constant 0 : i32
    return %arg0, %c0_i32 : i32, i32
  }
  func.func @transform_3(%arg0: i32) -> (i32, i32) {
    %c0_i32 = arith.constant 0 : i32
    %c0_i32_0 = arith.constant 0 : i32
    %c0_i32_1 = arith.constant 0 : i32
    return %c0_i32, %c0_i32_0 : i32, i32
  }
  func.func @transform_4(%arg0: i32) -> (i32, i32) {
    %c0_i32 = arith.constant 0 : i32
    %c0_i32_0 = arith.constant 0 : i32
    %c0_i32_1 = arith.constant 0 : i32
    return %c0_i32, %c0_i32_0 : i32, i32
  }
  func.func @transform_5(%arg0: i32) -> (i32, i32) {
    %c0_i32 = arith.constant 0 : i32
    %c0_i32_0 = arith.constant 0 : i32
    %c0_i32_1 = arith.constant 0 : i32
    return %c0_i32, %c0_i32_0 : i32, i32
  }
  func.func @transform_6(%arg0: i32) -> (i32, i32) {
    %c0_i32 = arith.constant 0 : i32
    %c0_i32_0 = arith.constant 0 : i32
    %c0_i32_1 = arith.constant 0 : i32
    return %c0_i32, %c0_i32_0 : i32, i32
  }
  func.func @transform_7(%arg0: i32) -> (i32, i32) {
    %c0_i32 = arith.constant 0 : i32
    %c0_i32_0 = arith.constant 0 : i32
    %c0_i32_1 = arith.constant 0 : i32
    return %c0_i32, %c0_i32_0 : i32, i32
  }
  func.func @transform_8(%arg0: i32) -> (i32, i32) {
    %c0_i32 = arith.constant 0 : i32
    %c0_i32_0 = arith.constant 0 : i32
    %c0_i32_1 = arith.constant 0 : i32
    return %c0_i32, %c0_i32_0 : i32, i32
  }
  func.func @transform_9(%arg0: i32) -> (i32, i32) {
    %c0_i32 = arith.constant 0 : i32
    %c0_i32_0 = arith.constant 0 : i32
    return %arg0, %c0_i32 : i32, i32
  }
}

</mosaic_0001>

<bundles_post_ra>
// kernel: tpu_custom_call.1
= control target key start
LH: loop header
LB: loop body
LE: loop exit
PB: predicated region body
PF: predicated region fallthrough
CT: control target
= control target key end

     0   :  { %15 = vsyncpa [#allocation4], 0  ;;  %s483_s0 = inlined_call_operand.<no memory space> [shape: f32[1], index: 0, kind: input, shape index: {}]   ;;  %s484_s1 = inlined_call_operand.hbm [shape: f32[8,32], index: 1, kind: input, shape index: {}]   ;;  %s485_s2 = inlined_call_operand.hbm [shape: f32[8,8], index: 2, kind: input, shape index: {}]   ;;  %s486_s3 = inlined_call_operand.hbm [shape: f32[32,128], index: 3, kind: input, shape index: {}]   ;;  %s487_s4 = inlined_call_operand.hbm [shape: f32[8,128], index: 4, kind: input, shape index: {}]   ;;  %s488_s5 = inlined_call_operand.vmem [shape: f32[1,128], index: 5, kind: input, shape index: {}]   ;;  %s489_s6 = inlined_call_operand.vmem [shape: f32[1,128], index: 6, kind: input, shape index: {}]   ;;  %s490_s7 = inlined_call_operand.hbm [shape: f32[128,128], index: 7, kind: input, shape index: {}]   ;;  %s491_s8 = inlined_call_operand.vmem [shape: f32[1,128], index: 8, kind: input, shape index: {}]   ;;  %s492_s9 = inlined_call_operand.hbm [shape: f32[8,128], index: 9, kind: output, shape index: {}]  }
   0x1   :  { %16 = vsyncpa [#allocation7], 0 }
   0x2   :  { %17 = vsyncpa [#allocation10], 0  ;;  %s37_s11 = sshll.u32 %s485_s2, 4  ;;  %s38_s11 = int_to_ptr.hbm [resolvable:$true] %s37_s11 }
   0x3   :  { %18 = vsyncpa [#allocation5], 0  ;;  %s395_s12 = smov [#allocation6]   ;;  %s61_s16 = sshll.u32 %s487_s4, 4  ;;  %s62_s16 = int_to_ptr.hbm [resolvable:$true] %s61_s16 }
   0x4   :  { %s39_s13 = sshll.u32 %s395_s12, 4  ;;  %s396_s17 = smov [#allocation9]   ;;  %s40_s13 = int_to_ptr.vmem [resolvable:$true] %s39_s13 }
   0x5   :  { %42 = dma.hbm_to_vmem [thread:$0]  %s38_s11, 128, %s40_s13, [#allocation7]  }
   0x6   :  { %s63_s18 = sshll.u32 %s396_s17, 4  ;;  %s26_s21 = sshll.u32 %s484_s1, 4  ;;  %s64_s18 = int_to_ptr.vmem [resolvable:$true] %s63_s18  ;;  %s27_s21 = int_to_ptr.hbm [resolvable:$true] %s26_s21 }
   0x7   :  { %66 = dma.hbm_to_vmem [thread:$0]  %s62_s16, 128, %s64_s18, [#allocation10]  }
   0x8   :  { %s47_s23 = sshll.u32 %s486_s3, 4  ;;  %s397_s24 = smov [#allocation3]   ;;  %s48_s23 = int_to_ptr.hbm [resolvable:$true] %s47_s23 }
   0x9   :  { %s28_s25 = sshll.u32 %s397_s24, 4  ;;  %s398_s4 = smov [#allocation8]   ;;  %s29_s25 = int_to_ptr.vmem [resolvable:$true] %s28_s25 }
   0xa   :  { %31 = dma.hbm_to_vmem [thread:$0]  %s27_s21, 128, %s29_s25, [#allocation4]  }
   0xb   :  { %s49_s26 = sshll.u32 %s398_s4, 4  ;;  %s399_s27 = smov 128   ;;  %s50_s26 = int_to_ptr.vmem [resolvable:$true] %s49_s26 }
   0xc   :  { %s400_s28 = smov 8   ;;  %s75_s30 = sshll.u32 %s490_s7, 4  ;;  %s76_s30 = int_to_ptr.hbm [resolvable:$true] %s75_s30 }
   0xd   :  { %55 = dma.hbm_to_vmem [thread:$0]  %s48_s23, 512, %s50_s26, [#allocation7], %s399_s27, %s399_s27, %s400_s28  }
   0xe   :  { %s401_s10 = smov [#allocation11]  }
   0xf   :  { %s77_s11 = sshll.u32 %s401_s10, 4  ;;  %s78_s11 = int_to_ptr.vmem [resolvable:$true] %s77_s11 }
  0x10   :  { %83 = dma.hbm_to_vmem [thread:$0]  %s76_s30, 2048, %s78_s11, [#allocation10], %s399_s27, %s399_s27, %s400_s28  }
  0x11   :  { %387 = dma.done.wait [#allocation4], 128  }
  0x12   :  { %388 = vsyncadd [#allocation4], 4294967168 }
  0x13   :  { %389 = dma.done.wait [#allocation7], 640  }
  0x14   :  { %390 = vsyncadd [#allocation7], 4294966656 }
  0x15   :  { %391 = dma.done.wait [#allocation10], 2176  }
  0x16   :  { %392 = vsyncadd [#allocation10], 4294965120  ;;  %v116_v0 = vld [vmem:[#allocation8 + $0x18] sm:$0xff]  ;;  %v115_v1 = vld [vmem:[#allocation8 + $0x10] sm:$0xff]  ;;  %vm119_vm0 = vcmask 64512   ;;  %vm143_vm1 = vcmask 261120   ;;  %v109_v24 = vstv %s483_s0 }
  0x17   :  { %159 = vmatpush.msra.mxu1 %v116_v0  ;;  %v118_v2 = vld [vmem:[#allocation9] sm:$0xff]  ;;  %v117_v3 = vld [vmem:[#allocation6] sm:$0xff]  ;;  %v114_v4 = vld [vmem:[#allocation8 + $0x8] sm:$0xff]  ;;  %s220_s20 = sshll.u32 %s492_s9, 4  ;;  %s221_s20 = int_to_ptr.hbm [resolvable:$true] %s220_s20 }
  0x18   :  { %138 = vmatpush.msra.mxu0 %v118_v2  ;;  %v187_v5 = vld [vmem:[#allocation11 + $0x78] sm:$0xff]  ;;  %v186_v6 = vld [vmem:[#allocation11 + $0x70] sm:$0xff]  ;;  %v112_v8 = vld [vmem:[#allocation3] sm:$0xff] }
  0x19   :  { %160 = vmatpush.msra.mxu1 %v115_v1  ;;  %232 = vmatmul.msk.f32.vlgmr.msra.gmra.mxu0 %vm119_vm0, %v117_v3  ;;  %v113_v7 = vld [vmem:[#allocation8] sm:$0xff]  ;;  %v185_v9 = vld [vmem:[#allocation11 + $0x68] sm:$0xff]  ;;  %v184_v10 = vld [vmem:[#allocation11 + $0x60] sm:$0xff] }
  0x1a   :  { %192 = vmatpush.msra.mxu2 %v187_v5  ;;  %v183_v11 = vld [vmem:[#allocation11 + $0x58] sm:$0xff]  ;;  %v182_v12 = vld [vmem:[#allocation11 + $0x50] sm:$0xff]  ;;  %v181_v13 = vld [vmem:[#allocation11 + $0x48] sm:$0xff] }
  0x1b   :  { %161 = vmatpush.msra.mxu1 %v114_v4  ;;  %v180_v14 = vld [vmem:[#allocation11 + $0x40] sm:$0xff]  ;;  %v179_v15 = vld [vmem:[#allocation11 + $0x38] sm:$0xff]  ;;  %v178_v16 = vld [vmem:[#allocation11 + $0x30] sm:$0xff] }
  0x1c   :  { %193 = vmatpush.msra.mxu2 %v186_v6  ;;  %v177_v17 = vld [vmem:[#allocation11 + $0x28] sm:$0xff]  ;;  %v176_v18 = vld [vmem:[#allocation11 + $0x20] sm:$0xff]  ;;  %v175_v19 = vld [vmem:[#allocation11 + $0x18] sm:$0xff] }
  0x1d   :  { %162 = vmatpush.msra.mxu1 %v113_v7  ;;  %v174_v20 = vld [vmem:[#allocation11 + $0x10] sm:$0xff]  ;;  %v173_v21 = vld [vmem:[#allocation11 + $0x8] sm:$0xff]  ;;  %v172_v22 = vld [vmem:[#allocation11] sm:$0xff] }
  0x1e   :  { %233 = vmatmul.msk.f32.vlgmr.msra.gmra.mxu1 %vm143_vm1, %v112_v8  ;;  %194 = vmatpush.msra.mxu2 %v185_v9  ;;  %v108_v23 = vld [vmem:[%s488_s5] sm:$0x1]  ;;  %s402_s5 = smov [#allocation12]  }
  0x1f   :  { %v110_v25 = vmul.f32 %v109_v24, %v108_v23  ;;  %v107_v26 = vld [vmem:[%s489_s6] sm:$0x1]  ;;  %s218_s18 = sshll.u32 %s402_s5, 4  ;;  %s219_s18 = int_to_ptr.vmem [resolvable:$true] %s218_s18 }
  0x20   :  { %195 = vmatpush.msra.mxu2 %v184_v10  ;;  %v242_v34 = vld [vmem:[%s491_s8] ss:$0 sm:$0xff] }
  0x21   :  { %v111_v27 = vadd.f32 %v110_v25, %v107_v26 }
  0x22   :  { %196 = vmatpush.msra.mxu2 %v183_v11 }
  0x23   :  { %v168_v29 = vperm.slane %v111_v27, 0 }
  0x24   :  { %197 = vmatpush.msra.mxu2 %v182_v12 }
  0x26   :  { %198 = vmatpush.msra.mxu2 %v181_v13 }
  0x28   :  { %199 = vmatpush.msra.mxu2 %v180_v14 }
  0x2a   :  { %200 = vmatpush.msra.mxu2 %v179_v15 }
  0x2c   :  { %201 = vmatpush.msra.mxu2 %v178_v16 }
  0x2e   :  { %202 = vmatpush.msra.mxu2 %v177_v17 }
  0x30   :  { %203 = vmatpush.msra.mxu2 %v176_v18 }
  0x32   :  { %204 = vmatpush.msra.mxu2 %v175_v19 }
  0x34   :  { %205 = vmatpush.msra.mxu2 %v174_v20 }
  0x36   :  { %206 = vmatpush.msra.mxu2 %v173_v21 }
  0x38   :  { %207 = vmatpush.msra.mxu2 %v172_v22 }
  0x96   :  { %v140_v28 = vpop.f32.mrf.mxu0 }
  0x9b   :  { %v164_v30 = vpop.f32.mrf.mxu1 }
  0x9c   :  { %v165_v31 = vadd.f32 %v164_v30, %v140_v28 }
  0x9e   :  { %v170_v32 = vadd.f32 %v168_v29, %v165_v31 }
  0xa0   :  { %v171_v33 = vmax.f32 %v170_v32, 0.0 }
  0xa2   :  { %208 = vmatmul.f32.vlgmr.msra.gmra.mxu2 %v171_v33 }
 0x125   :  { %v209_v35 = vpop.f32.mrf.mxu2 }
 0x126   :  { %v210_v36 = vadd.f32 %v242_v34, %v209_v35 }
 0x128   :  { %212 = vst [vmem:[#allocation12] sm:$0xff] %v210_v36 }
 0x129   :  { %223 = dma.vmem_to_hbm [thread:$0]  %s219_s18, 128, %s221_s20, [#allocation5]  }
 0x12a   :  { %393 = dma.done.wait [#allocation5], 128  }
 0x12b   :  { %394 = vsyncadd [#allocation5], 4294967168 }
 0x12c   :  { %228 = vsyncpa [#allocation4], 1 }
 0x12d   :  { %229 = vsyncpa [#allocation7], 1 }
 0x12e   :  { %230 = vsyncpa [#allocation10], 1 }
 0x12f   :  { %231 = vsyncpa [#allocation5], 1 }

</bundles_post_ra>
